<compile_context>
chip_gen: v7x
topology: tpu7x:2x2x1
jax: 0.10.0
libtpu: 0.0.40
codegen_flags: <defaults>
</compile_context>

<pallas_src>
import functools

import jax
import jax.numpy as jnp
from jax import lax
from jax.experimental import pallas as pl
from jax.experimental.pallas import tpu as pltpu

LEAKY_SLOPE = 0.1  # CamLiFlow MLP2d uses LeakyReLU(0.1); change if reference differs.
VMEM_LIMIT_BYTES = 32 * 1024 * 1024  # safe on v5e/v6e (128 MiB) and v7x (64 MiB physical)


def _leaky_relu(x):
    return jnp.where(x >= 0, x, LEAKY_SLOPE * x)


def _relu(x):
    return jnp.maximum(x, 0.0)


def _small_linear(x, w, b):
    """Tiny dense layer (contraction dim 3 or 8) as unrolled VPU broadcast-FMAs,
    keeping the MXU free for the big cost_mlp matmuls.
    x: [M, Cin], w: [Cin, Cout], b: [1, Cout] -> [M, Cout]."""
    acc = jnp.broadcast_to(b, (x.shape[0], w.shape[1]))
    for i in range(w.shape[0]):  # Cin is a small static int
        acc = acc + x[:, i:i + 1] * w[i:i + 1, :]
    return acc


def _pick_tile(n, target, multiple=8):
    """Largest divisor of n that is <= target and a multiple of `multiple`
    (or n itself when n <= target / no such divisor exists)."""
    if n <= target:
        return n
    for t in range(min(target, n), 0, -1):
        if n % t == 0 and t % multiple == 0:
            return t
    return n


# --------------------------------------------------------------------------
# Kernel 1: pairwise squared distances (tiled over queries)
# --------------------------------------------------------------------------
def _pairwise_dist_kernel(qq_ref, q_ref, pp_ref, p_ref, dist_ref):
    # q: [TQ, 3] (channels-last), p: [3, Np] (channels-first -> no in-kernel transpose)
    cross = jnp.dot(q_ref[0], p_ref[0], preferred_element_type=jnp.float32)  # [TQ, Np]
    dist_ref[0] = qq_ref[0] + pp_ref[0] - 2.0 * cross


def pairwise_sq_dist(query_cl, input_cf):
    """query_cl: [B, Nq, 3], input_cf: [B, 3, Np] -> [B, Nq, Np] squared distances."""
    B, Nq, _ = query_cl.shape
    Np = input_cf.shape[2]
    qq = jnp.sum(query_cl * query_cl, axis=-1, keepdims=True)   # [B, Nq, 1]
    pp = jnp.sum(input_cf * input_cf, axis=1, keepdims=True)    # [B, 1, Np]

    # Tile queries so the [TQ, Np] output block (x2 buffers) stays well under VMEM.
    tq_target = max(8, min(512, (8 * 1024 * 1024) // (4 * max(Np, 1))))
    TQ = _pick_tile(Nq, tq_target)

    return pl.pallas_call(
        _pairwise_dist_kernel,
        out_shape=jax.ShapeDtypeStruct((B, Nq, Np), jnp.float32),
        grid=(B, Nq // TQ),
        in_specs=[
            pl.BlockSpec((1, TQ, 1), lambda b, t: (b, t, 0)),
            pl.BlockSpec((1, TQ, 3), lambda b, t: (b, t, 0)),
            pl.BlockSpec((1, 1, Np), lambda b, t: (b, 0, 0)),
            pl.BlockSpec((1, 3, Np), lambda b, t: (b, 0, 0)),
        ],
        out_specs=pl.BlockSpec((1, TQ, Np), lambda b, t: (b, t, 0)),
        compiler_params=pltpu.CompilerParams(
            dimension_semantics=("parallel", "parallel"),
            vmem_limit_bytes=VMEM_LIMIT_BYTES),
    )(qq, query_cl, pp, input_cf)


def k_nearest_neighbor(input_xyz_cf, query_xyz_cl, k):
    """input_xyz_cf: [B, 3, Np], query_xyz_cl: [B, Nq, 3] -> indices [B, Nq, k]."""
    dist = pairwise_sq_dist(query_xyz_cl, input_xyz_cf)
    # TODO(synk): fuse top-k into the distance kernel (running top-k in VMEM scratch)
    # so the full [B, Nq, Np] distance matrix never round-trips through HBM.
    _, idx = lax.top_k(-dist, k)
    return idx


def batch_gather(data, idx):
    """data: [B, N, C], idx: [B, M, K] -> [B, M, K, C]."""
    # TODO(synk): move this gather into the Pallas kernels (scalar-prefetch indices +
    # DMA row gather) to avoid materializing the k-expanded tensors in HBM.
    return jax.vmap(lambda d, i: d[i])(data, idx)


# --------------------------------------------------------------------------
# Kernel 2: fused cost_mlp + weight_net2 + sum over k   -> p2n cost
# --------------------------------------------------------------------------
def _p2n_cost_kernel(feat1_ref, knnf2_ref, xyzn_ref,
                     w1f1_ref, w1f2_ref, w1x_ref, b1_ref, w2_ref, b2_ref,
                     wa_ref, ba_ref, wb_ref, bb_ref, wc_ref, bc_ref,
                     out_ref, *, K):
    TN, Cout = out_ref.shape[1], out_ref.shape[2]

    feat1 = feat1_ref[0]                       # [TN, C]
    knnf2 = knnf2_ref[0]                       # [TN*K, C]
    xyzn = xyzn_ref[0]                         # [TN*K, 3]

    # ---- cost_mlp layer 1: W1 split by input block; the feat1 term is computed
    # once per point and broadcast over k (no k-replicated concat in HBM). ----
    h_pt = jnp.dot(feat1.astype(jnp.bfloat16), w1f1_ref[...],
                   preferred_element_type=jnp.float32)                  # [TN, Cout]
    h_nk = jnp.dot(knnf2.astype(jnp.bfloat16), w1f2_ref[...],
                   preferred_element_type=jnp.float32)                  # [TN*K, Cout]
    h_nk = h_nk + jnp.dot(xyzn.astype(jnp.bfloat16), w1x_ref[...],
                          preferred_element_type=jnp.float32)
    h = h_nk.reshape(TN, K, Cout) + h_pt[:, None, :] + b1_ref[...]
    h = _leaky_relu(h)                                                  # [TN, K, Cout]

    # ---- cost_mlp layer 2 ----
    p2p = jnp.dot(h.reshape(TN * K, Cout).astype(jnp.bfloat16), w2_ref[...],
                  preferred_element_type=jnp.float32) + b2_ref[...]
    p2p = _leaky_relu(p2p)                                              # [TN*K, Cout]

    # ---- weight_net2: 3->8 and 8->8 on the VPU, 8->Cout on the MXU ----
    w = _relu(_small_linear(xyzn, wa_ref[...], ba_ref[...]))
    w = _relu(_small_linear(w, wb_ref[...], bb_ref[...]))
    w = _relu(jnp.dot(w, wc_ref[...], preferred_element_type=jnp.float32)
              + bc_ref[...])                                            # [TN*K, Cout]

    # ---- weighted sum over the K neighbors of each point (direct K-group sum) ----
    out_ref[0] = jnp.sum((w * p2p).reshape(TN, K, Cout), axis=1)


def p2n_cost(feat1_cl, knn_feat2, xyz_norm, params, N, K):
    """feat1_cl: [B, N, C], knn_feat2: [B, N*K, C], xyz_norm: [B, N*K, 3] -> [B, N, Cout]."""
    B, _, C = feat1_cl.shape
    (w1, b1), (w2, b2) = params["cost_mlp"]
    (wa, ba), (wb, bb), (wc, bc) = params["weight_net2"]
    Cout = w2.shape[1]

    # Split cost_mlp layer-1 weight into feat1 / knn_feat2 / xyz row blocks (bf16 for MXU).
    w1f1 = w1[:C].astype(jnp.bfloat16)
    w1f2 = w1[C:2 * C].astype(jnp.bfloat16)
    w1x = w1[2 * C:].astype(jnp.bfloat16)
    w2b = w2.astype(jnp.bfloat16)

    TN = _pick_tile(N, max(8, min(512, (4 * 1024 * 1024) // (4 * K * max(C, Cout, 1)))))
    grid = (B, N // TN)

    def wspec(a):
        return pl.BlockSpec(a.shape, lambda b, t: (0, 0))

    return pl.pallas_call(
        functools.partial(_p2n_cost_kernel, K=K),
        out_shape=jax.ShapeDtypeStruct((B, N, Cout), jnp.float32),
        grid=grid,
        in_specs=[
            pl.BlockSpec((1, TN, C), lambda b, t: (b, t, 0)),
            pl.BlockSpec((1, TN * K, C), lambda b, t: (b, t, 0)),
            pl.BlockSpec((1, TN * K, 3), lambda b, t: (b, t, 0)),
            wspec(w1f1), wspec(w1f2), wspec(w1x), wspec(b1), wspec(w2b), wspec(b2),
            wspec(wa), wspec(ba), wspec(wb), wspec(bb), wspec(wc), wspec(bc),
        ],
        out_specs=pl.BlockSpec((1, TN, Cout), lambda b, t: (b, t, 0)),
        compiler_params=pltpu.CompilerParams(
            dimension_semantics=("parallel", "parallel"),
            vmem_limit_bytes=VMEM_LIMIT_BYTES),
    )(feat1_cl, knn_feat2, xyz_norm,
      w1f1, w1f2, w1x, b1, w2b, b2, wa, ba, wb, bb, wc, bc)


# --------------------------------------------------------------------------
# Kernel 3: weight_net1 + weighted sum over k of gathered p2n cost -> n2n cost
# --------------------------------------------------------------------------
def _n2n_cost_kernel(xyzn_ref, cost_ref,
                     wa_ref, ba_ref, wb_ref, bb_ref, wc_ref, bc_ref,
                     out_ref, *, K):
    TN, Cout = out_ref.shape[1], out_ref.shape[2]
    xyzn = xyzn_ref[0]                         # [TN*K, 3]

    w = _relu(_small_linear(xyzn, wa_ref[...], ba_ref[...]))
    w = _relu(_small_linear(w, wb_ref[...], bb_ref[...]))
    w = _relu(jnp.dot(w, wc_ref[...], preferred_element_type=jnp.float32)
              + bc_ref[...])                                            # [TN*K, Cout]

    out_ref[0] = jnp.sum((w * cost_ref[0]).reshape(TN, K, Cout), axis=1)


def n2n_cost(xyz_norm, cost_nk, params, N, K):
    """xyz_norm: [B, N*K, 3], cost_nk: [B, N*K, Cout] -> [B, N, Cout]."""
    B = xyz_norm.shape[0]
    (wa, ba), (wb, bb), (wc, bc) = params["weight_net1"]
    Cout = wc.shape[1]

    TN = _pick_tile(N, max(8, min(512, (4 * 1024 * 1024) // (4 * K * max(Cout, 1)))))
    grid = (B, N // TN)

    def wspec(a):
        return pl.BlockSpec(a.shape, lambda b, t: (0, 0))

    return pl.pallas_call(
        functools.partial(_n2n_cost_kernel, K=K),
        out_shape=jax.ShapeDtypeStruct((B, N, Cout), jnp.float32),
        grid=grid,
        in_specs=[
            pl.BlockSpec((1, TN * K, 3), lambda b, t: (b, t, 0)),
            pl.BlockSpec((1, TN * K, Cout), lambda b, t: (b, t, 0)),
            wspec(wa), wspec(ba), wspec(wb), wspec(bb), wspec(wc), wspec(bc),
        ],
        out_specs=pl.BlockSpec((1, TN, Cout), lambda b, t: (b, t, 0)),
        compiler_params=pltpu.CompilerParams(
            dimension_semantics=("parallel", "parallel"),
            vmem_limit_bytes=VMEM_LIMIT_BYTES),
    )(xyz_norm, cost_nk, wa, ba, wb, bb, wc, bc)


# --------------------------------------------------------------------------
# Parameter init (deterministic, PyTorch-Conv2d-like uniform fan-in init)
# --------------------------------------------------------------------------
def init_params(key, in_channels, out_channels):
    ccat = 3 + 2 * in_channels

    def lin(k, cin, cout):
        k1, k2 = jax.random.split(k)
        scale = 1.0 / jnp.sqrt(cin)
        w = jax.random.uniform(k1, (cin, cout), jnp.float32, -scale, scale)
        b = jax.random.uniform(k2, (1, cout), jnp.float32, -scale, scale)
        return w, b

    ks = jax.random.split(key, 8)
    return {
        "cost_mlp": [lin(ks[0], ccat, out_channels), lin(ks[1], out_channels, out_channels)],
        "weight_net1": [lin(ks[2], 3, 8), lin(ks[3], 8, 8), lin(ks[4], 8, out_channels)],
        "weight_net2": [lin(ks[5], 3, 8), lin(ks[6], 8, 8), lin(ks[7], 8, out_channels)],
    }


# --------------------------------------------------------------------------
# Full Correlation3D forward
# --------------------------------------------------------------------------
def correlation3d_forward(params, xyz1, feat1, xyz2, feat2, k, knn_indices_1in1=None):
    """Inputs channels-first (PyTorch convention):
       xyz1, xyz2: [B, 3, N]; feat1, feat2: [B, C, N].  Returns [B, Cout, N]."""
    B, C, N = feat1.shape

    xyz1_cl = jnp.transpose(xyz1, (0, 2, 1))     # [B, N, 3]
    xyz2_cl = jnp.transpose(xyz2, (0, 2, 1))
    feat1_cl = jnp.transpose(feat1, (0, 2, 1))   # [B, N, C]
    feat2_cl = jnp.transpose(feat2, (0, 2, 1))

    # --- point-to-point / point-to-neighborhood cost ---
    idx_1in2 = k_nearest_neighbor(input_xyz_cf=xyz2, query_xyz_cl=xyz1_cl, k=k)  # [B,N,k]
    knn_xyz2 = batch_gather(xyz2_cl, idx_1in2)                                   # [B,N,k,3]
    knn_xyz2_norm = (knn_xyz2 - xyz1_cl[:, :, None, :]).reshape(B, N * k, 3)
    knn_feat2 = batch_gather(feat2_cl, idx_1in2).reshape(B, N * k, C)

    p2n = p2n_cost(feat1_cl, knn_feat2, knn_xyz2_norm, params, N, k)             # [B,N,Cout]

    # --- neighborhood-to-neighborhood cost ---
    if knn_indices_1in1 is None:
        idx_1in1 = k_nearest_neighbor(input_xyz_cf=xyz1, query_xyz_cl=xyz1_cl, k=k)
    else:
        assert knn_indices_1in1.shape == (B, N, k)
        idx_1in1 = knn_indices_1in1

    knn_xyz1 = batch_gather(xyz1_cl, idx_1in1)                                   # [B,N,k,3]
    knn_xyz1_norm = (knn_xyz1 - xyz1_cl[:, :, None, :]).reshape(B, N * k, 3)
    gathered_cost = batch_gather(p2n, idx_1in1).reshape(B, N * k, -1)

    n2n = n2n_cost(knn_xyz1_norm, gathered_cost, params, N, k)                   # [B,N,Cout]
    return jnp.transpose(n2n, (0, 2, 1))                                         # [B,Cout,N]


if __name__ == "__main__":
    B, C, N = 2, 4, 16
    K_NN = 8          # Correlation3D k (neighbors)
    COUT = 32         # out_channels

    key = jax.random.PRNGKey(0)
    k_xyz1, k_xyz2, k_f1, k_f2, k_par = jax.random.split(key, 5)
    xyz1 = jax.random.normal(k_xyz1, (B, 3, N), jnp.float32)
    xyz2 = jax.random.normal(k_xyz2, (B, 3, N), jnp.float32)
    feat1 = jax.random.normal(k_f1, (B, C, N), jnp.float32)
    feat2 = jax.random.normal(k_f2, (B, C, N), jnp.float32)

    params = init_params(k_par, in_channels=C, out_channels=COUT)

    out = correlation3d_forward(params, xyz1, feat1, xyz2, feat2, K_NN)
    out = jax.block_until_ready(out)
    assert out.shape == (B, COUT, N), out.shape
    assert jnp.all(jnp.isfinite(out))
    print("KERNEL_OK")
</pallas_src>

<mosaic_0001>
module attributes {stable_mosaic.version = 11 : i64} {
  func.func @_pairwise_dist_kernel(%arg0: i32, %arg1: i32, %arg2: memref<1x16x1xf32, #tpu.memory_space<vmem>>, %arg3: memref<1x16x3xf32, #tpu.memory_space<vmem>>, %arg4: memref<1x1x16xf32, #tpu.memory_space<vmem>>, %arg5: memref<1x3x16xf32, #tpu.memory_space<vmem>>, %arg6: memref<1x16x16xf32, #tpu.memory_space<vmem>>) attributes {dimension_semantics = [#tpu.dimension_semantics<parallel>, #tpu.dimension_semantics<parallel>], iteration_bounds = array<i64: 2, 1>, scalar_prefetch = 0 : i64, scratch_operands = 0 : i64, tpu.core_type = #tpu.core_type<tc>, window_params = [{transform_indices = @transform_0, window_bounds = array<i64: 1, 16, 1>}, {transform_indices = @transform_1, window_bounds = array<i64: 1, 16, 3>}, {transform_indices = @transform_2, window_bounds = array<i64: 1, 1, 16>}, {transform_indices = @transform_3, window_bounds = array<i64: 1, 3, 16>}, {transform_indices = @transform_4, window_bounds = array<i64: 1, 16, 16>}]} {
    %c0 = arith.constant 0 : index
    %c0_0 = arith.constant 0 : index
    %c0_1 = arith.constant 0 : index
    %0 = vector.load %arg3[%c0, %c0_0, %c0_1] : memref<1x16x3xf32, #tpu.memory_space<vmem>>, vector<1x16x3xf32>
    %1 = vector.shape_cast %0 : vector<1x16x3xf32> to vector<16x3xf32>
    %c0_2 = arith.constant 0 : index
    %c0_3 = arith.constant 0 : index
    %c0_4 = arith.constant 0 : index
    %2 = vector.load %arg5[%c0_2, %c0_3, %c0_4] : memref<1x3x16xf32, #tpu.memory_space<vmem>>, vector<1x3x16xf32>
    %3 = vector.shape_cast %2 : vector<1x3x16xf32> to vector<3x16xf32>
    %cst = arith.constant dense<0.000000e+00> : vector<16x16xf32>
    %4 = tpu.matmul %1, %3, %cst {dimension_numbers = #tpu.dot_dimension_numbers<[1], [0], [0], [1], [0, 0, 1, 1], [], []>} : vector<16x3xf32>, vector<3x16xf32>, vector<16x16xf32> -> vector<16x16xf32>
    %c0_5 = arith.constant 0 : index
    %c0_6 = arith.constant 0 : index
    %c0_7 = arith.constant 0 : index
    %5 = vector.load %arg2[%c0_5, %c0_6, %c0_7] : memref<1x16x1xf32, #tpu.memory_space<vmem>>, vector<1x16x1xf32>
    %6 = vector.shape_cast %5 : vector<1x16x1xf32> to vector<16x1xf32>
    %c0_8 = arith.constant 0 : index
    %c0_9 = arith.constant 0 : index
    %c0_10 = arith.constant 0 : index
    %7 = vector.load %arg4[%c0_8, %c0_9, %c0_10] : memref<1x1x16xf32, #tpu.memory_space<vmem>>, vector<1x1x16xf32>
    %8 = vector.shape_cast %7 : vector<1x1x16xf32> to vector<1x16xf32>
    %9 = vector.broadcast %6 : vector<16x1xf32> to vector<16x16xf32>
    %10 = vector.broadcast %8 : vector<1x16xf32> to vector<16x16xf32>
    %11 = arith.addf %9, %10 : vector<16x16xf32>
    %cst_11 = arith.constant 2.000000e+00 : f32
    %12 = vector.broadcast %cst_11 : f32 to vector<16x16xf32>
    %13 = arith.mulf %12, %4 : vector<16x16xf32>
    %14 = arith.subf %11, %13 : vector<16x16xf32>
    %c0_12 = arith.constant 0 : index
    %c0_13 = arith.constant 0 : index
    %c0_14 = arith.constant 0 : index
    %15 = vector.load %arg6[%c0_12, %c0_13, %c0_14] : memref<1x16x16xf32, #tpu.memory_space<vmem>>, vector<1x16x16xf32>
    %16 = vector.shape_cast %15 : vector<1x16x16xf32> to vector<16x16xf32>
    %17 = vector.shape_cast %14 : vector<16x16xf32> to vector<1x16x16xf32>
    tpu.vector_store %arg6[%c0_12, %c0_13, %c0_14], %17 {strides = array<i32>} : memref<1x16x16xf32, #tpu.memory_space<vmem>>, vector<1x16x16xf32>,
    return
  }
  func.func @transform_0(%arg0: i32, %arg1: i32) -> (i32, i32, i32) {
    %c0_i32 = arith.constant 0 : i32
    %c0_i32_0 = arith.constant 0 : i32
    return %arg0, %arg1, %c0_i32 : i32, i32, i32
  }
  func.func @transform_1(%arg0: i32, %arg1: i32) -> (i32, i32, i32) {
    %c0_i32 = arith.constant 0 : i32
    %c0_i32_0 = arith.constant 0 : i32
    return %arg0, %arg1, %c0_i32 : i32, i32, i32
  }
  func.func @transform_2(%arg0: i32, %arg1: i32) -> (i32, i32, i32) {
    %c0_i32 = arith.constant 0 : i32
    %c0_i32_0 = arith.constant 0 : i32
    %c0_i32_1 = arith.constant 0 : i32
    return %arg0, %c0_i32, %c0_i32_0 : i32, i32, i32
  }
  func.func @transform_3(%arg0: i32, %arg1: i32) -> (i32, i32, i32) {
    %c0_i32 = arith.constant 0 : i32
    %c0_i32_0 = arith.constant 0 : i32
    %c0_i32_1 = arith.constant 0 : i32
    return %arg0, %c0_i32, %c0_i32_0 : i32, i32, i32
  }
  func.func @transform_4(%arg0: i32, %arg1: i32) -> (i32, i32, i32) {
    %c0_i32 = arith.constant 0 : i32
    %c0_i32_0 = arith.constant 0 : i32
    return %arg0, %arg1, %c0_i32 : i32, i32, i32
  }
}

</mosaic_0001>

<bundles_post_ra>
// kernel: tpu_custom_call.1
= control target key start
LH: loop header
LB: loop body
LE: loop exit
PB: predicated region body
PF: predicated region fallthrough
CT: control target
= control target key end

     0   :  { %9 = vsyncpa [#allocation3], 0  ;;  %s868_s0 = inlined_call_operand.vmem [shape: f32[2,16,1], index: 0, kind: input, shape index: {}]   ;;  %s869_s1 = inlined_call_operand.vmem [shape: f32[2,16,3], index: 1, kind: input, shape index: {}]   ;;  %s870_s2 = inlined_call_operand.vmem [shape: f32[2,1,16], index: 2, kind: input, shape index: {}]   ;;  %s871_s3 = inlined_call_operand.vmem [shape: f32[2,3,16], index: 3, kind: input, shape index: {}]   ;;  %s872_s4 = inlined_call_operand.hbm [shape: f32[2,16,16], index: 4, kind: output, shape index: {}]  }
   0x1   :  { %11 = vsyncpa [#allocation3 + $0x1], 0  ;;  %s744_s15 = smov 0   ;;  %s746_s16 = smov 0  }
   0x2   :  { %s748_s17 = smov 0   ;;  %s750_s18 = smov 0  }
   0x3   :  { %s752_s19 = smov 0   ;;  %s754_s20 = smov 0  }
   0x4 LB: > { %s545_s21 = sadd.s32 4294967295, %s713_s20   ;;  %s546_s22 = sadd.s32 4294967294, %s713_s20   ;;  %s713_s20 = sphi %s754_s20, %s17_s20   ;;  %s709_s19 = sphi %s752_s19, %s879_s19   ;;  %s705_s18 = sphi %s750_s18, %s878_s18   ;;  %s701_s17 = sphi %s748_s17, %s877_s17   ;;  %s697_s16 = sphi %s746_s16, %s876_s16   ;;  %s693_s15 = sphi %s744_s15, %s875_s15  }
   0x5   : > { %s29_s23 = sadd.s32 1, %s709_s19  ;;  %s146_s24 = sadd.s32 1, %s701_s17 }
   0x6   : > { %p31_p0 = scmp.ge.s32.totalorder %s29_s23, 2  ;;  %p156_p1 = scmp.ne.s32.totalorder %s701_s17, %s697_s16 }
   0x7   : > { %p157_p2 = scmp.eq.s32.totalorder %s545_s21, 1  ;;  %p162_p3 = scmp.ne.s32.totalorder %s697_s16, %s693_s15 }
   0x8   : > { %s881_s23 = smov (%p31_p0, %s29_s23), 0  ;;  %p163_p5 = scmp.eq.s32.totalorder %s546_s22, 1 }
   0x9   : > { %p784_p4 = por %p157_p2, %p156_p1  ;;  %s141_s26 = ssub.s32 %s709_s19, %s881_s23 }
   0xa   : > { %p549_p6 = scmp.ge.s32.totalorder %s713_s20, 1  ;;  %p144_p7 = scmp.eq.s32.totalorder %s141_s26, 0 }
   0xb   : > { %p791_p8 = por %p163_p5, %p162_p3  ;;  %p220_p9 = scmp.lt.s32.totalorder %s713_s20, 3 }
   0xc   : > { %s797_s28 = scalar_select %p144_p7, %s701_s17, %s146_s24  }
   0xd   : > { %p221_p10 = pnand %p549_p6, %p220_p9 }
   0xe   : > { %p267_p11 = scmp.lt.s32.totalorder (!%p221_p10), %s705_s18, 1  ;;  %v715_v0 = vmov (!%p221_p10), 0   ;;  %vm304_vm0 = vcmask (!%p221_p10), 1042432   ;;  %vm297_vm1 = vcmask (!%p221_p10), 23552   ;;  %s263_s21 = sand.u32 (!%p221_p10), 1, %s697_s16   ;;  %vm408_vm2 = vcmask (!%p221_p10), 130048  }
   0xf   : > { %224 = sbr.rel (%p221_p10) target bundleno = 261 (0x105), region = 36  ;;  %634 = vset.pattern.permute.xlu0 (!%p221_p10), %v715_v0  ;;  %s550_s22 = sshll.u32 (!%p221_p10), %s263_s21, 4 }
  0x10   : > { %s567_s7 = sshll.u32 (!%p221_p10), %s705_s18, 8 }
  0x11   : > { %s818_s10 = scalar_lea.hbm (!%p221_p10), %s872_s4, %s567_s7 }
  0x16   : > { %s268_s29 = scalar_select %p267_p11, %s705_s18, 1 }
  0x17   : > { %s822_s18 = scalar_lea.sflag [#allocation3], %s263_s21 }
  0x18   : > { %s555_s30 = sshll.u32 %s268_s29, 2  ;;  %s565_s5 = sshll.u32 %s268_s29, 4 }
  0x19   : > { %s292_s8 = scalar_lea.vmem %s871_s3, %s555_s30  ;;  %s284_s11 = scalar_lea.vmem %s869_s1, %s565_s5 }
  0x1a   : > { %v296_v1 = vld [vmem:[%s292_s8] sm:$0x7]  ;;  %v295_v3 = vld [vmem:[%s284_s11 + $0x8] sm:$0xff]  ;;  %s274_s14 = scalar_lea.vmem %s868_s0, %s565_s5  ;;  %s288_s30 = scalar_lea.vmem %s870_s2, %s268_s29 }
  0x1b   : > { %v294_v2 = vld [vmem:[%s284_s11] sm:$0xff]  ;;  %571 = vmatprep.subr.msk.mxu0 %vm304_vm0, %v296_v1  ;;  %v384_v5 = vld [vmem:[%s274_s14 + $0x8] sm:$0xff]  ;;  %s265_s5 = scalar_lea.vmem [#allocation2], %s550_s22  ;;  %s716_s11 = smov [#allocation2]  }
  0x1c   : > { %573 = vmatprep.mubr.msk.f32.mxu0 %vm297_vm1, %v294_v2  ;;  %v383_v4 = vld [vmem:[%s274_s14] sm:$0xff]  ;;  %572 = vmatpush3.msk.msra.mxu0 %vm304_vm0, %v296_v1  ;;  %s427_s6 = sshll.u32 %s265_s5, 4  ;;  %s639_s12 = sshll.u32 %s716_s11, 4  ;;  %s820_s6 = int_to_ptr.vmem [resolvable:$true] %s427_s6  ;;  %s640_s12 = int_to_ptr.vmem [resolvable:$false] %s639_s12 }
  0x1d   : > { %388 = vperm.xlu0 %634, %v383_v4   ;;  %574 = vmatmul.mubr.msk.f32.vlgmr.msra.gmra.mrb[0].mxu0 %vm297_vm1, %v295_v3  ;;  %v559_v7 = vld [vmem:[%s288_s30] ss:$0 sm:$0xff]  ;;  %s635_s29 = scalar_lea.vmem %s820_s6, 256  ;;  %s641_s13 = scalar_lea.vmem %s640_s12, 512 }
  0x1e   : > { %p636_p12 = scmp.ne.s32.totalorder %s820_s6, %s635_s29  ;;  %p642_p1 = scmp.lt.s32.totalorder %s820_s6, %s640_s12 }
  0x1f   : > { %p643_p2 = scmp.lt.s32.totalorder %s641_s13, %s635_s29 }
  0x20   : > { %p637_p13 = pnand %p636_p12, %p784_p4 }
  0x21   : > { %393 = vperm.xlu0 %634, %v384_v5   ;;  %p644_p3 = por %p643_p2, %p642_p1 }
  0x22   : > { %p638_p0 = pneg %p637_p13 }
  0x24   : > { %p645_p5 = pnand %p644_p3, %p638_p0 }
  0x9c   : > { %v389_v6 = vpop.permute.xlu0 %388 }
  0x9d   : > { %v402_v13 = vadd.f32 %v559_v7, %v389_v6 }
  0xa0   : > { %v394_v8 = vpop.permute.xlu0 %393 }
  0xa1   : > { %v403_v10 = vadd.f32 %v559_v7, %v394_v8 }
  0xf0   : > { %v575_v9 = vpop.f32.mrb[0].mxu0 }
  0xf1   : > { %v405_v11 = vmul.f32 2.0, %v575_v9  ;;  %v374_v12 = vpop.f32.mrb[1].mxu0 }
  0xf2   : > { %v404_v14 = vmul.f32 2.0, %v374_v12 }
  0xf3   : > { %v407_v15 = vsub.f32 %v403_v10, %v405_v11 }
  0xf4   : > { %v406_v16 = vsub.f32 %v402_v13, %v404_v14 }
  0xf5   : > { %410 = vst.msk [vmem:[%s265_s5 + $0x8] sm:$0xff] %vm408_vm2, %v407_v15 }
  0xf6   : > { %409 = vst.msk [vmem:[%s265_s5] sm:$0xff] %vm408_vm2, %v406_v16 }
  0xf7   : > { %648 = shalt.err (!%p645_p5)
}
  0xf8   : > { %s649_s14 = scalar_lea.hbm %s818_s10, 256  ;;  %s653_s24 = scalar_lea.hbm %s872_s4, 512 }
  0xf9   : > { %p650_p6 = scmp.ne.s32.totalorder %s818_s10, %s649_s14  ;;  %p654_p10 = scmp.lt.u32.totalorder %s818_s10, %s872_s4 }
  0xfa   : > { %p655_p11 = scmp.lt.u32.totalorder %s653_s24, %s649_s14  ;;  %p657_p13 = scmp.lt.u32.totalorder %s649_s14, %s818_s10 }
  0xfb   : > { %p651_p7 = pnand %p650_p6, %p784_p4 }
  0xfc   : > { %p656_p12 = por %p655_p11, %p654_p10 }
  0xfd   : > { %p652_p9 = pneg %p651_p7 }
  0xfe   : > { %p658_p0 = por %p657_p13, %p656_p12 }
 0x100   : > { %p659_p1 = pnand %p658_p0, %p652_p9 }
 0x102   : > { %662 = shalt.err (!%p659_p1)
}
 0x103   : > { %s717_s5 = smov 128   ;;  %s718_s7 = smov 8  }
 0x104   : > { %576 = dma.vmem_to_hbm [thread:$0]  (%p784_p4), %s820_s6, 256, %s818_s10, %s822_s18, %s717_s5, %s717_s5, %s718_s7  }
 0x105 PF: > { %p582_p2 = scmp.ge.s32.totalorder %s713_s20, 2  ;;  %s442_s8 = sand.u32 1, %s693_s15  }
 0x106   : > { %s443_s9 = scalar_lea.sflag [#allocation3], %s442_s8 }
 0x107   : > { %p579_p3 = pnand %p582_p2, %p791_p8 }
 0x109   : > { %688 = dma.done.wait (!%p579_p3), %s443_s9, 256  }
 0x10a   : > { %690 = vsyncadd (!%p579_p3), %s443_s9, 4294967040  ;;  %s17_s20 = sadd.s32 1, %s713_s20   ;;  %s875_s15 = smov %s697_s16 }
 0x10b   : > { %p14_p5 = scmp.ge.s32.totalorder %s17_s20, 4   ;;  %s876_s16 = smov %s701_s17 }
 0x10c   : > { %s877_s17 = smov %s797_s28  ;;  %s878_s18 = smov %s709_s19 }
 0x10d   : > { %s879_s19 = smov %s881_s23  ;;  %16 = sbr.rel (!%p14_p5) target bundleno = 4 (0x4), region = 80 }
 0x114   :  { %448 = vsyncpa [#allocation3], 1 }
 0x115   :  { %450 = vsyncpa [#allocation3 + $0x1], 1 }

</bundles_post_ra>
